<compile_context>
chip_gen: v7x
topology: tpu7x:2x2x1
jax: 0.10.0
libtpu: 0.0.40
codegen_flags: <defaults>
</compile_context>

<pallas_src>
import functools
import numpy as np
import jax
import jax.numpy as jnp
from jax.experimental import pallas as pl
from jax.experimental.pallas import tpu as pltpu


def _round_up(x, m):
    return (x + m - 1) // m * m


def _snr_loss_kernel(x_ref, ridx_ref, w_ref, o_ref, *, kb, log_denom):
    # x_ref:    (TB, N)   bf16 time-series rows
    # ridx_ref: (TB, 1)   int32 band-local reference (pulse) bin per row
    # w_ref:    (N, WW)   bf16 band-trimmed [cos | -sin] real-DFT matrix
    # o_ref:    (TB, 1)   f32 per-row SNR loss
    xf = jnp.dot(x_ref[...], w_ref[...],
                 preferred_element_type=jnp.float32)         # (TB, WW)
    sq = xf * xf                                             # squared spectrum cols

    tb, ww = sq.shape
    c = jax.lax.broadcasted_iota(jnp.int32, (tb, ww), 1)
    l = jnp.where(c < kb, c, c - kb)      # band-local bin index (re & im halves)
    valid = c < 2 * kb                    # drop lane-pad columns
    ridx = ridx_ref[...]                  # (TB, 1) int32

    # pulse power = re^2 + im^2 at the reference bin (two matching columns)
    pulse = jnp.sum(jnp.where(valid & (l == ridx), sq, 0.0),
                    axis=-1, keepdims=True)

    # "other" band power over local bins [0, ridx-1) U [ridx+2, KB)
    other_mask = valid & ((l < ridx - 1) | (l >= ridx + 2))
    other = jnp.sum(jnp.where(other_mask, sq, 0.0), axis=-1, keepdims=True)

    # -10*log10(pulse / (other / C)) = -10/ln10 * (log(pulse) - log(other) + log C)
    inv_ln10 = jnp.float32(1.0 / np.log(10.0))
    o_ref[...] = (-10.0 * inv_ln10) * (
        jnp.log(pulse) - jnp.log(other) + jnp.float32(log_denom))


@functools.partial(jax.jit, static_argnames=("Fs",))
def _snr_loss_impl(outputs, targets, Fs):
    N = outputs.shape[-1]
    K = N // 2 + 1

    # Static pulse-band bin range (trace-time constants).
    f = np.linspace(0.0, Fs / 2.0, K).astype(np.float32)
    min_idx = int(np.argmin(np.abs(f - 40.0 / 60.0)))
    max_idx = int(np.argmin(np.abs(f - 250.0 / 60.0)))
    KB = max_idx - min_idx                       # bins actually used by the loss
    WW = _round_up(2 * KB, 128)                  # one lane slab: [cos | -sin | 0pad]
    log_denom = float(np.log(KB - 3))

    x = outputs.reshape(-1, N)
    t = targets.reshape(-1)
    B = x.shape[0]

    # Per-row reference bin (torch first-occurrence argmin), rebased to the
    # trimmed band's local coordinates.
    # TODO(synk): targets outside the 40-250 bpm band fall outside the trimmed
    # spectrum and yield NaN rows (torch's negative-slice edge behavior there
    # is ill-defined anyway).
    ref_idx = jnp.argmin(jnp.abs(jnp.asarray(f)[None, :] - t[:, None]), axis=-1)
    ridx_local = (ref_idx.astype(jnp.int32) - min_idx).reshape(-1, 1)

    # Band-trimmed fused [cos | -sin] real-DFT matrix, 1/sqrt(N) normalized
    # (rfft normalized=True), bf16 weights with f32 MXU accumulation.
    n = np.arange(N, dtype=np.float64)[:, None]
    kk = np.arange(min_idx, max_idx, dtype=np.float64)[None, :]
    ang = 2.0 * np.pi * n * kk / N
    w = np.zeros((N, WW), dtype=np.float32)
    w[:, :KB] = np.cos(ang) / np.sqrt(N)
    w[:, KB:2 * KB] = -np.sin(ang) / np.sqrt(N)
    w = jnp.asarray(w, dtype=jnp.bfloat16)

    # Batch tiling: large tiles to amortize per-grid-step overhead, but keep
    # >= 2 grid steps when possible so v7x megacore gets both TensorCores busy.
    B8 = _round_up(B, 8)
    if B8 > 1024:
        TB = 1024
    elif B8 > 8:
        TB = _round_up((B8 + 1) // 2, 8)
    else:
        TB = B8
    B_pad = _round_up(B8, TB)

    # Cast to bf16 + pad in one fused op (no f32 intermediate HBM pass).
    if B_pad == B:
        x_p = x.astype(jnp.bfloat16)
        r_p = ridx_local
    else:
        x_p = jnp.zeros((B_pad, N), jnp.bfloat16).at[:B].set(x.astype(jnp.bfloat16))
        r_p = jnp.zeros((B_pad, 1), jnp.int32).at[:B].set(ridx_local)

    # VMEM budget from actual buffers (double-buffered streams + f32 temps),
    # capped at 48 MiB to leave headroom under v7x's 64 MiB.
    vmem_need = (2 * TB * N * 2          # x double-buffer (bf16)
                 + 2 * N * WW * 2        # DFT matrix (bf16, constant block)
                 + 3 * TB * WW * 4       # xf / sq / select intermediates (f32)
                 + 4 * TB * 4)           # ridx + out double-buffers
    vmem_limit = int(min(max(32 * 1024 * 1024, 2 * vmem_need), 48 * 1024 * 1024))

    kernel = functools.partial(_snr_loss_kernel, kb=KB, log_denom=log_denom)

    losses = pl.pallas_call(
        kernel,
        out_shape=jax.ShapeDtypeStruct((B_pad, 1), jnp.float32),
        grid=(B_pad // TB,),
        in_specs=[
            pl.BlockSpec((TB, N), lambda i: (i, 0)),
            pl.BlockSpec((TB, 1), lambda i: (i, 0)),
            # Constant block index -> VMEM-resident across steps. For large N,
            # single-buffering this spec would halve its VMEM footprint.
            pl.BlockSpec((N, WW), lambda i: (0, 0)),
        ],
        out_specs=pl.BlockSpec((TB, 1), lambda i: (i, 0)),
        compiler_params=pltpu.CompilerParams(
            dimension_semantics=("parallel",),
            vmem_limit_bytes=vmem_limit),
    )(x_p, r_p, w)

    # Final mean over the real rows (padded rows are sliced away).
    return jnp.mean(losses[:B, 0])


def snr_loss(outputs, targets, Fs=20):
    return _snr_loss_impl(jnp.asarray(outputs), jnp.asarray(targets), Fs=int(Fs))


def _snr_loss_ref(outputs, targets, Fs=20):
    """Pure numpy reference replicating the torch module."""
    x = np.asarray(outputs, np.float64).reshape(-1, outputs.shape[-1])
    t = np.asarray(targets, np.float64).reshape(-1)
    N = x.shape[-1]
    f = np.linspace(0.0, Fs / 2.0, N // 2 + 1).astype(np.float32)
    min_idx = int(np.argmin(np.abs(f - 40.0 / 60.0)))
    max_idx = int(np.argmin(np.abs(f - 250.0 / 60.0)))
    X = np.fft.rfft(x, axis=-1) / np.sqrt(N)
    P1 = X.real ** 2 + X.imag ** 2
    losses = []
    for c in range(x.shape[0]):
        ri = int(np.argmin(np.abs(f - t[c])))
        pulse = P1[c, ri]
        other = (P1[c, min_idx:ri - 1].sum() + P1[c, ri + 2:max_idx].sum()) \
            / (max_idx - min_idx - 3)
        losses.append(-10.0 * np.log10(pulse / other))
    return float(np.mean(losses))


if __name__ == "__main__":
    Fs = 20
    N = 128
    key = jax.random.PRNGKey(0)
    k_t, k_n = jax.random.split(key)

    # targets: one pulse frequency [Hz] per (batch, channel) row, inside the band
    targets = jax.random.uniform(k_t, (2, 4), dtype=jnp.float32,
                                 minval=1.0, maxval=3.0)
    # outputs: sinusoid at the target frequency plus noise -> 8 rows of N=128
    ts = jnp.arange(N, dtype=jnp.float32) / Fs
    clean = jnp.sin(2.0 * jnp.pi * targets[..., None] * ts[None, None, :])
    noise = 0.2 * jax.random.normal(k_n, (2, 4, N), dtype=jnp.float32)
    outputs = clean + noise

    loss = snr_loss(outputs, targets, Fs=Fs)
    loss = jax.block_until_ready(loss)

    ref = _snr_loss_ref(np.asarray(outputs), np.asarray(targets), Fs=Fs)
    if not np.allclose(float(loss), ref, rtol=2e-2, atol=2e-2):
        raise AssertionError(f"mismatch: pallas={float(loss)} ref={ref}")

    print("KERNEL_OK")
</pallas_src>

<mosaic_0001>
module attributes {stable_mosaic.version = 11 : i64} {
  func.func @_snr_loss_kernel(%arg0: i32, %arg1: memref<8x128xbf16, #tpu.memory_space<vmem>>, %arg2: memref<8x1xi32, #tpu.memory_space<vmem>>, %arg3: memref<128x128xbf16, #tpu.memory_space<vmem>>, %arg4: memref<8x1xf32, #tpu.memory_space<vmem>>) attributes {dimension_semantics = [#tpu.dimension_semantics<parallel>], iteration_bounds = array<i64: 1>, scalar_prefetch = 0 : i64, scratch_operands = 0 : i64, tpu.core_type = #tpu.core_type<tc>, window_params = [{transform_indices = @transform_0, window_bounds = array<i64: 8, 128>}, {transform_indices = @transform_1, window_bounds = array<i64: 8, 1>}, {pipeline_mode = #tpu.pipeline_mode<synchronous>, transform_indices = @transform_2, window_bounds = array<i64: 128, 128>}, {transform_indices = @transform_3, window_bounds = array<i64: 8, 1>}]} {
    %c0 = arith.constant 0 : index
    %c0_0 = arith.constant 0 : index
    %0 = vector.load %arg1[%c0, %c0_0] : memref<8x128xbf16, #tpu.memory_space<vmem>>, vector<8x128xbf16>
    %c0_1 = arith.constant 0 : index
    %c0_2 = arith.constant 0 : index
    %1 = vector.load %arg3[%c0_1, %c0_2] : memref<128x128xbf16, #tpu.memory_space<vmem>>, vector<128x128xbf16>
    %cst = arith.constant dense<0.000000e+00> : vector<8x128xf32>
    %2 = tpu.matmul %0, %1, %cst {dimension_numbers = #tpu.dot_dimension_numbers<[1], [0], [0], [1], [0, 0, 1, 1], [], []>} : vector<8x128xbf16>, vector<128x128xbf16>, vector<8x128xf32> -> vector<8x128xf32>
    %3 = arith.mulf %2, %2 : vector<8x128xf32>
    %4 = tpu.iota {dimensions = array<i32: 1>} : vector<8x128xi32>
    %c23_i32 = arith.constant 23 : i32
    %5 = vector.broadcast %c23_i32 : i32 to vector<8x128xi32>
    %6 = arith.cmpi slt, %4, %5 : vector<8x128xi32>
    %c23_i32_3 = arith.constant 23 : i32
    %7 = vector.broadcast %c23_i32_3 : i32 to vector<8x128xi32>
    %8 = arith.subi %4, %7 : vector<8x128xi32>
    %9 = arith.select %6, %4, %8 : vector<8x128xi1>, vector<8x128xi32>
    %c46_i32 = arith.constant 46 : i32
    %10 = vector.broadcast %c46_i32 : i32 to vector<8x128xi32>
    %11 = arith.cmpi slt, %4, %10 : vector<8x128xi32>
    %c0_4 = arith.constant 0 : index
    %c0_5 = arith.constant 0 : index
    %12 = vector.load %arg2[%c0_4, %c0_5] : memref<8x1xi32, #tpu.memory_space<vmem>>, vector<8x1xi32>
    %13 = vector.broadcast %12 : vector<8x1xi32> to vector<8x128xi32>
    %14 = arith.cmpi eq, %9, %13 : vector<8x128xi32>
    %15 = arith.andi %11, %14 : vector<8x128xi1>
    %cst_6 = arith.constant 0.000000e+00 : f32
    %16 = vector.broadcast %cst_6 : f32 to vector<8x128xf32>
    %17 = arith.select %15, %3, %16 : vector<8x128xi1>, vector<8x128xf32>
    %cst_7 = arith.constant dense<0.000000e+00> : vector<8xf32>
    %18 = vector.multi_reduction <add>, %17, %cst_7 [1] : vector<8x128xf32> to vector<8xf32>
    %19 = vector.shape_cast %18 : vector<8xf32> to vector<8x1xf32>
    %c1_i32 = arith.constant 1 : i32
    %20 = vector.broadcast %c1_i32 : i32 to vector<8x1xi32>
    %21 = arith.subi %12, %20 : vector<8x1xi32>
    %22 = vector.broadcast %21 : vector<8x1xi32> to vector<8x128xi32>
    %23 = arith.cmpi slt, %9, %22 : vector<8x128xi32>
    %c2_i32 = arith.constant 2 : i32
    %24 = vector.broadcast %c2_i32 : i32 to vector<8x1xi32>
    %25 = arith.addi %12, %24 : vector<8x1xi32>
    %26 = vector.broadcast %25 : vector<8x1xi32> to vector<8x128xi32>
    %27 = arith.cmpi sge, %9, %26 : vector<8x128xi32>
    %28 = arith.ori %23, %27 : vector<8x128xi1>
    %29 = arith.andi %11, %28 : vector<8x128xi1>
    %cst_8 = arith.constant 0.000000e+00 : f32
    %30 = vector.broadcast %cst_8 : f32 to vector<8x128xf32>
    %31 = arith.select %29, %3, %30 : vector<8x128xi1>, vector<8x128xf32>
    %cst_9 = arith.constant dense<0.000000e+00> : vector<8xf32>
    %32 = vector.multi_reduction <add>, %31, %cst_9 [1] : vector<8x128xf32> to vector<8xf32>
    %33 = vector.shape_cast %32 : vector<8xf32> to vector<8x1xf32>
    %cst_10 = arith.constant -1.000000e+01 : f32
    %cst_11 = arith.constant 0.434294492 : f32
    %34 = arith.mulf %cst_10, %cst_11 : f32
    %35 = math.log %19 : vector<8x1xf32>
    %36 = math.log %33 : vector<8x1xf32>
    %37 = arith.subf %35, %36 : vector<8x1xf32>
    %cst_12 = arith.constant 2.99573231 : f32
    %38 = vector.broadcast %cst_12 : f32 to vector<8x1xf32>
    %39 = arith.addf %37, %38 : vector<8x1xf32>
    %40 = vector.broadcast %34 : f32 to vector<8x1xf32>
    %41 = arith.mulf %40, %39 : vector<8x1xf32>
    %c0_13 = arith.constant 0 : index
    %c0_14 = arith.constant 0 : index
    %42 = vector.load %arg4[%c0_13, %c0_14] : memref<8x1xf32, #tpu.memory_space<vmem>>, vector<8x1xf32>
    tpu.vector_store %arg4[%c0_13, %c0_14], %41 {strides = array<i32>} : memref<8x1xf32, #tpu.memory_space<vmem>>, vector<8x1xf32>,
    return
  }
  func.func @transform_0(%arg0: i32) -> (i32, i32) {
    %c0_i32 = arith.constant 0 : i32
    %c0_i32_0 = arith.constant 0 : i32
    return %arg0, %c0_i32 : i32, i32
  }
  func.func @transform_1(%arg0: i32) -> (i32, i32) {
    %c0_i32 = arith.constant 0 : i32
    %c0_i32_0 = arith.constant 0 : i32
    return %arg0, %c0_i32 : i32, i32
  }
  func.func @transform_2(%arg0: i32) -> (i32, i32) {
    %c0_i32 = arith.constant 0 : i32
    %c0_i32_0 = arith.constant 0 : i32
    %c0_i32_1 = arith.constant 0 : i32
    return %c0_i32, %c0_i32_0 : i32, i32
  }
  func.func @transform_3(%arg0: i32) -> (i32, i32) {
    %c0_i32 = arith.constant 0 : i32
    %c0_i32_0 = arith.constant 0 : i32
    return %arg0, %c0_i32 : i32, i32
  }
}

</mosaic_0001>

<bundles_post_ra>
// kernel: sub.12
= control target key start
LH: loop header
LB: loop body
LE: loop exit
PB: predicated region body
PF: predicated region fallthrough
CT: control target
= control target key end

     0   :  { %vm7_vm0 = vcmask 31744   ;;  %vm13_vm1 = vcmask 64544   ;;  %s39_s0 = inlined_call_operand.vmem [shape: f32[2,4], index: 0, kind: input, shape index: {}]   ;;  %s40_s1 = inlined_call_operand.vmem [shape: f32[8], index: 1, kind: output, shape index: {}]  }
   0x1   :  { %v4_v0 = vld [vmem:[%s39_s0] sm:$0x3]  ;;  %s22_s0 = smov 4  }
   0x2   :  { %5 = vst [vmem:[#allocation1] sm:$0x3] %v4_v0 }
   0x9   :  { %v10_v1 = vld [vmem:[#allocation1 + $0x1] sm:$0x1]   ;;  %v6_v2 = vld [vmem:[#allocation1] sm:$0x1]  }
   0xa   :  { %11 = vrot.lane.b32.xlu0 %v10_v1, %s22_s0  ;;  %8 = vst.msk [vmem:[#allocation0] sm:$0x1] %vm7_vm0, %v6_v2  }
  0x7c   :  { %v12_v3 = vpop.permute.xlu0 %11  }
  0x7d   :  { %14 = vst.msk [vmem:[#allocation0] sm:$0x1] %vm13_vm1, %v12_v3  }
  0x84   :  { %v18_v4 = vld [vmem:[#allocation0] sm:$0x1] }
  0x85   :  { %20 = vst [vmem:[%s40_s1] sm:$0x1] %v18_v4 }

// kernel: _snr_loss_impl.1
= control target key start
LH: loop header
LB: loop body
LE: loop exit
PB: predicated region body
PF: predicated region fallthrough
CT: control target
= control target key end

     0   :  { %8 = vsyncpa [#allocation3], 0  ;;  %s262_s12 = smov [#allocation2]   ;;  %s309_s0 = inlined_call_operand.vmem [shape: bf16[8,128], index: 0, kind: input, shape index: {}]   ;;  %s310_s1 = inlined_call_operand.vmem [shape: s32[8,1], index: 1, kind: input, shape index: {}]   ;;  %s311_s2 = inlined_call_operand.hbm [shape: bf16[128,128], index: 2, kind: input, shape index: {}]   ;;  %s312_s3 = inlined_call_operand.vmem [shape: f32[8,1], index: 3, kind: output, shape index: {}]  }
   0x1   :  { %s18_s13 = sshll.u32 %s262_s12, 4  ;;  %s238_s16 = scalar_lea.hbm %s311_s2, 1024  ;;  %s19_s13 = int_to_ptr.vmem [resolvable:$true] %s18_s13 }
   0x2   :  { %p239_p0 = scmp.ne.s32.totalorder %s311_s2, %s238_s16  ;;  %p242_p1 = scmp.lt.u32.totalorder %s238_s16, %s311_s2 }
   0x4   :  { %p244_p2 = pnand %p242_p1, %p239_p0 }
   0x6   :  { %247 = shalt.err (!%p244_p2)
}
   0x7   :  { %s248_s21 = scalar_lea.vmem %s19_s13, 1024  ;;  %p253_p4 = scmp.lt.s32.totalorder %s19_s13, %s19_s13 }
   0x8   :  { %p249_p3 = scmp.ne.s32.totalorder %s19_s13, %s248_s21  ;;  %p254_p5 = scmp.lt.s32.totalorder %s248_s21, %s248_s21 }
   0xa   :  { %p255_p6 = por %p254_p5, %p253_p4 }
   0xc   :  { %p256_p7 = pnand %p255_p6, %p249_p3 }
   0xe   :  { %259 = shalt.err (!%p256_p7)
}
   0xf   :  { %s263_s22 = smov 64   ;;  %s264_s23 = smov 4  }
  0x10   :  { %24 = dma.hbm_to_vmem [thread:$0]  %s311_s2, 1024, %s19_s13, [#allocation3], %s263_s22, %s263_s22, %s264_s23  }
  0x11   :  { %260 = dma.done.wait [#allocation3], 1024  }
  0x12   :  { %261 = vsyncadd [#allocation3], 4294966272  ;;  %v265_v0 = vmov 0.0   ;;  %vm266_vm0 = vmmov 0   ;;  %v267_v1 = vmov 0   ;;  %v226_v2 = vld [vmem:[#allocation2] sm:$0xff]   ;;  %v135_v14 = vlaneseq }
  0x13   :  { %198 = vmatprep.subr.bf16.mxu0 %v265_v0  ;;  %214 = vmatprep.mubr.msk.bf16.mxu0 %vm266_vm0, %v265_v0  ;;  %v227_v3 = vld [vmem:[#allocation2 + $0x8] sm:$0xff]   ;;  %v228_v4 = vld [vmem:[#allocation2 + $0x10] sm:$0xff]   ;;  %v141_v5 = vld [vmem:[%s310_s1] sm:$0xff]  ;;  %vm172_vm9 = vcmask 7168  }
  0x14   :  { %224 = vset.pattern.permute.xlu0 %v267_v1  ;;  %225 = vset.pattern.permute.xlu1 %v267_v1  ;;  %v188_v6 = vadd.s32 4294967295, %v141_v5  ;;  %v229_v7 = vld [vmem:[#allocation2 + $0x18] sm:$0xff]   ;;  %v155_v8 = vadd.s32 2, %v141_v5  ;;  %v230_v9 = vld [vmem:[#allocation2 + $0x20] sm:$0xff]   ;;  %v231_v10 = vld [vmem:[#allocation2 + $0x28] sm:$0xff]   ;;  %v136_v15 = vand.u32 127, %v135_v14 }
  0x15   :  { %199 = vmatpush3.bf16.msra.mxu0 %v226_v2  ;;  %143 = vperm.xlu1 %225, %v141_v5   ;;  %v232_v11 = vld [vmem:[#allocation2 + $0x30] sm:$0xff]   ;;  %v233_v12 = vld [vmem:[#allocation2 + $0x38] sm:$0xff]   ;;  %v29_v13 = vld [vmem:[%s309_s0] sm:$0xf] }
  0x16   :  { %200 = vmatprep.subr.bf16.mxu0 %v265_v0  ;;  %152 = vperm.xlu0 %224, %v188_v6   ;;  %v187_v17 = vadd.s32 4294967273, %v136_v15  ;;  %vm137_vm1 = vcmp.lt.s32.totalorder %v136_v15, 23  ;;  %vm140_vm6 = vcmp.lt.s32.totalorder %v136_v15, 46 }
  0x18   :  { %v139_v18 = vsel %vm137_vm1, %v136_v15, %v187_v17 }
  0x19   :  { %201 = vmatpush3.bf16.msra.mxu0 %v227_v3 }
  0x1a   :  { %202 = vmatprep.subr.bf16.mxu0 %v265_v0  ;;  %157 = vperm.xlu0 %224, %v155_v8  }
  0x1d   :  { %203 = vmatpush3.bf16.msra.mxu0 %v228_v4 }
  0x1e   :  { %204 = vmatprep.subr.bf16.mxu0 %v265_v0 }
  0x21   :  { %205 = vmatpush3.bf16.msra.mxu0 %v229_v7 }
  0x22   :  { %206 = vmatprep.subr.bf16.mxu0 %v265_v0 }
  0x25   :  { %207 = vmatpush3.bf16.msra.mxu0 %v230_v9 }
  0x26   :  { %208 = vmatprep.subr.bf16.mxu0 %v265_v0 }
  0x29   :  { %209 = vmatpush3.bf16.msra.mxu0 %v231_v10 }
  0x2a   :  { %210 = vmatprep.subr.bf16.mxu0 %v265_v0 }
  0x2d   :  { %211 = vmatpush3.bf16.msra.mxu0 %v232_v11 }
  0x2e   :  { %212 = vmatprep.subr.bf16.mxu0 %v265_v0 }
  0x31   :  { %213 = vmatpush3.bf16.msra.mxu0 %v233_v12 }
  0x34   :  { %215 = vmatmul.mubr.bf16.vlgmr.msra.gmra.mrb[0].mxu0 %v29_v13 }
  0x94   :  { %v144_v20 = vpop.permute.xlu1 %143 }
  0x95   :  { %v153_v16 = vpop.permute.xlu0 %152  ;;  %vm145_vm4 = vcmp.eq.s32.totalorder %v139_v18, %v144_v20 }
  0x96   :  { %vm154_vm2 = vcmp.lt.s32.totalorder %v139_v18, %v153_v16  ;;  %vm146_vm7 = vmand %vm140_vm6, %vm145_vm4 }
  0x99   :  { %v158_v19 = vpop.permute.xlu0 %157 }
  0x9a   :  { %vm159_vm3 = vcmp.ge.s32.totalorder %v139_v18, %v158_v19 }
  0x9b   :  { %vm160_vm5 = vmor %vm154_vm2, %vm159_vm3 }
  0x9c   :  { %vm161_vm8 = vmand %vm140_vm6, %vm160_vm5 }
 0x107   :  { %v128_v21 = vpop.f32.mrb[0].mxu0 }
 0x108   :  { %v134_v22 = vmul.f32 %v128_v21, %v128_v21  ;;  %v216_v23 = vpop.f32.mrb[1].mxu0 }
 0x109   :  { %v131_v24 = vpop.f32.mrb[2].mxu0 }
 0x10a   :  { %v217_v25 = vpop.f32.mrb[3].mxu0  ;;  %v162_v26 = vsel %vm161_vm8, %v134_v22, 0.0  ;;  %v147_v27 = vsel %vm146_vm7, %v134_v22, 0.0 }
 0x10b   :  { %163 = vadd.xlane.f32.xlu0 %v162_v26  ;;  %148 = vadd.xlane.f32.xlu1 %v147_v27 }
 0x198   :  { %v164_v28 = vpop.xlane.xlu0 %163  ;;  %v149_v29 = vpop.xlane.xlu1 %148 }
 0x199   :  { %234 = vlog2.f32 %v164_v28 }
 0x19a   :  { %236 = vlog2.f32 %v149_v29 }
 0x1a3   :  { %v235_v30 = vpop.eup %234 }
 0x1a4   :  { %v237_v31 = vpop.eup %236  ;;  %v168_v32 = vmul.f32 0.6931472, %v235_v30 }
 0x1a5   :  { %v166_v33 = vmul.f32 0.6931472, %v237_v31 }
 0x1a7   :  { %v169_v34 = vsub.f32 %v166_v33, %v168_v32 }
 0x1a9   :  { %v170_v35 = vadd.f32 2.9957323, %v169_v34 }
 0x1ab   :  { %v171_v36 = vmul.f32 -4.342945, %v170_v35 }
 0x1ad   :  { %173 = vst.msk [vmem:[%s312_s3] sm:$0xff] %vm172_vm9, %v171_v36 }
 0x1ae   :  { %178 = vsyncpa [#allocation3], 1 }

</bundles_post_ra>
